<compile_context>
chip_gen: v6e
topology: v6e:2x2x1
jax: 0.10.0
libtpu: 0.0.40
codegen_flags: <defaults>
</compile_context>

<pallas_src>
import functools

import jax
import jax.numpy as jnp
from jax.experimental import pallas as pl
from jax.experimental.pallas import tpu as pltpu


def _round_up(x, m):
    return ((x + m - 1) // m) * m


def _label_smoothing_kernel(
    x_ref, t_ref, out_ref, acc_ref, *,
    confidence, smoothing, n_total, tile_n, tiles_per_shard, inv_n,
):
    shard = pl.program_id(0)
    i = pl.program_id(1)
    n_inner = pl.num_programs(1)

    @pl.when(i == 0)
    def _init():
        acc_ref[...] = jnp.zeros_like(acc_ref)

    x = x_ref[...].astype(jnp.float32)           # (TILE_N, C)
    t = t_ref[...]                                # (TILE_N, 1) int32
    c = x.shape[-1]

    # Row-wise logsumexp (numerically stable); logprobs never materialized.
    m = jnp.max(x, axis=-1, keepdims=True)                         # (TILE_N, 1)
    sumexp = jnp.sum(jnp.exp(x - m), axis=-1, keepdims=True)
    lse = m + jnp.log(sumexp)                                      # (TILE_N, 1)

    # x[row, target[row]] via one-hot select (no dynamic gather on TPU).
    col = jax.lax.broadcasted_iota(jnp.int32, x.shape, 1)
    x_tgt = jnp.sum(jnp.where(col == t, x, 0.0), axis=-1, keepdims=True)

    nll_loss = lse - x_tgt                                         # -logprob[target]
    smooth_loss = lse - jnp.sum(x, axis=-1, keepdims=True) * (1.0 / c)
    loss = confidence * nll_loss + smoothing * smooth_loss         # (TILE_N, 1)

    # Mask rows past the true batch size (tail tile / over-provisioned shard).
    base = (shard * tiles_per_shard + i) * tile_n
    row = jax.lax.broadcasted_iota(jnp.int32, loss.shape, 0)
    loss = jnp.where(row < (n_total - base), loss, 0.0)

    # Running per-shard partial sum (resident in VMEM scratch across the
    # reduction axis; output is written only once, in the finalize branch).
    acc_ref[...] += jnp.sum(loss, axis=0, keepdims=True)

    @pl.when(i == n_inner - 1)
    def _finalize():
        # Pre-scaled by 1/N (single multiply); lane-dense (8,128) slab.
        out_ref[...] = jnp.broadcast_to(acc_ref[...] * inv_n, out_ref.shape)


def label_smoothing_loss(x, target, smoothing=0.1, tile_n=None, num_shards=2):
    """x: (N, C) float logits (f32 or bf16); target: (N,) int labels. Scalar loss."""
    n, c = x.shape
    confidence = 1.0 - smoothing
    itemsize = jnp.dtype(x.dtype).itemsize
    row_align = 16 if itemsize == 2 else 8       # bf16 packs two rows per sublane

    if tile_n is None:
        # ~4 MiB of logits per tile (the pipeline double-buffers it).
        tile_n = max(row_align, (4 * 2**20) // max(1, c * itemsize))
    tile_n = _round_up(tile_n, row_align)
    tile_n = min(tile_n, _round_up(n, row_align))

    n_tiles = pl.cdiv(n, tile_n)
    num_shards = max(1, min(num_shards, n_tiles))
    tiles_per_shard = pl.cdiv(n_tiles, num_shards)
    max_blk = n_tiles - 1

    def x_map(p, i):
        return (jnp.minimum(p * tiles_per_shard + i, max_blk), 0)

    def t_map(p, i):
        return (jnp.minimum(p * tiles_per_shard + i, max_blk), 0)

    def o_map(p, i):
        return (p, 0)

    # Explicit scoped-VMEM limit: double-buffered inputs + output slabs + slack,
    # min 16 MiB (v5e default), capped at 48 MiB (safe on v7x's 64 MiB VMEM).
    needed = 2 * (tile_n * c * itemsize + tile_n * 4) + num_shards * 8 * 128 * 4 + 4096
    vmem_limit = int(min(48 * 2**20, max(16 * 2**20, 4 * needed)))

    t2 = target.astype(jnp.int32).reshape(n, 1)

    kernel = functools.partial(
        _label_smoothing_kernel,
        confidence=float(confidence),
        smoothing=float(smoothing),
        n_total=n,
        tile_n=tile_n,
        tiles_per_shard=tiles_per_shard,
        inv_n=1.0 / n,
    )

    out = pl.pallas_call(
        kernel,
        out_shape=jax.ShapeDtypeStruct((num_shards * 8, 128), jnp.float32),
        grid_spec=pltpu.PrefetchScalarGridSpec(
            num_scalar_prefetch=0,
            grid=(num_shards, tiles_per_shard),
            in_specs=[
                pl.BlockSpec((tile_n, c), x_map),
                pl.BlockSpec((tile_n, 1), t_map),
            ],
            out_specs=pl.BlockSpec((8, 128), o_map),
            scratch_shapes=[pltpu.VMEM((1, 1), jnp.float32)],
        ),
        compiler_params=pltpu.CompilerParams(
            dimension_semantics=("parallel", "arbitrary"),
            vmem_limit_bytes=vmem_limit,
        ),
    )(x, t2)

    # Each shard's slab is filled with its (already 1/N-scaled) partial sum.
    partials = out.reshape(num_shards, 8, 128)[:, 0, 0]
    return jnp.sum(partials)


def _reference(x, target, smoothing=0.1):
    confidence = 1.0 - smoothing
    logprobs = jax.nn.log_softmax(x.astype(jnp.float32), axis=-1)
    nll = -jnp.take_along_axis(
        logprobs, target[:, None].astype(jnp.int32), axis=-1)[:, 0]
    smooth = -jnp.mean(logprobs, axis=-1)
    return jnp.mean(confidence * nll + smoothing * smooth)


if __name__ == "__main__":
    key = jax.random.PRNGKey(0)
    kx, kt = jax.random.split(key)

    N, C = 32, 128            # small batch, classes on the lane axis
    smoothing = 0.1

    x = jax.random.normal(kx, (N, C), dtype=jnp.float32)
    target = jax.random.randint(kt, (N,), 0, C, dtype=jnp.int32)

    # tile_n=8 -> 4 batch tiles, 2 shards x 2 inner steps: exercises the
    # init/accumulate/finalize reduction and the parallel shard axis.
    loss = label_smoothing_loss(x, target, smoothing=smoothing, tile_n=8)
    loss = jax.block_until_ready(loss)

    ref = _reference(x, target, smoothing=smoothing)
    assert jnp.allclose(loss, ref, atol=1e-5, rtol=1e-5), (loss, ref)

    print("KERNEL_OK")
</pallas_src>

<mosaic_0001>
module attributes {stable_mosaic.version = 11 : i64} {
  func.func @_label_smoothing_kernel(%arg0: i32, %arg1: i32, %arg2: memref<8x128xf32, #tpu.memory_space<vmem>>, %arg3: memref<8x1xi32, #tpu.memory_space<vmem>>, %arg4: memref<8x128xf32, #tpu.memory_space<vmem>>, %arg5: memref<1x1xf32, #tpu.memory_space<vmem>>) attributes {dimension_semantics = [#tpu.dimension_semantics<parallel>, #tpu.dimension_semantics<arbitrary>], iteration_bounds = array<i64: 2, 2>, scalar_prefetch = 0 : i64, scratch_operands = 1 : i64, tpu.core_type = #tpu.core_type<tc>, window_params = [{transform_indices = @transform_0, window_bounds = array<i64: 8, 128>}, {transform_indices = @transform_1, window_bounds = array<i64: 8, 1>}, {transform_indices = @transform_2, window_bounds = array<i64: 8, 128>}]} {
    %c0_i32 = arith.constant 0 : i32
    %0 = arith.cmpi eq, %arg1, %c0_i32 : i32
    %1 = arith.extui %0 : i1 to i32
    %c0_i32_0 = arith.constant 0 : i32
    %2 = arith.cmpi ne, %1, %c0_i32_0 : i32
    scf.if %2 {
      %cst_18 = arith.constant 0.000000e+00 : f32
      %49 = vector.broadcast %cst_18 : f32 to vector<1x1xf32>
      %c0_19 = arith.constant 0 : index
      %c0_20 = arith.constant 0 : index
      %50 = vector.load %arg5[%c0_19, %c0_20] : memref<1x1xf32, #tpu.memory_space<vmem>>, vector<1x1xf32>
      tpu.vector_store %arg5[%c0_19, %c0_20], %49 {strides = array<i32>} : memref<1x1xf32, #tpu.memory_space<vmem>>, vector<1x1xf32>,
    } else {
    }
    %c0 = arith.constant 0 : index
    %c0_1 = arith.constant 0 : index
    %3 = vector.load %arg2[%c0, %c0_1] : memref<8x128xf32, #tpu.memory_space<vmem>>, vector<8x128xf32>
    %c0_2 = arith.constant 0 : index
    %c0_3 = arith.constant 0 : index
    %4 = vector.load %arg3[%c0_2, %c0_3] : memref<8x1xi32, #tpu.memory_space<vmem>>, vector<8x1xi32>
    %cst = arith.constant dense<0xFF800000> : vector<8xf32>
    %5 = vector.multi_reduction <maximumf>, %3, %cst [1] : vector<8x128xf32> to vector<8xf32>
    %6 = vector.shape_cast %5 : vector<8xf32> to vector<8x1xf32>
    %7 = vector.broadcast %6 : vector<8x1xf32> to vector<8x128xf32>
    %8 = arith.subf %3, %7 : vector<8x128xf32>
    %9 = math.exp %8 : vector<8x128xf32>
    %cst_4 = arith.constant dense<0.000000e+00> : vector<8xf32>
    %10 = vector.multi_reduction <add>, %9, %cst_4 [1] : vector<8x128xf32> to vector<8xf32>
    %11 = vector.shape_cast %10 : vector<8xf32> to vector<8x1xf32>
    %12 = math.log %11 : vector<8x1xf32>
    %13 = arith.addf %6, %12 : vector<8x1xf32>
    %14 = tpu.iota {dimensions = array<i32: 1>} : vector<8x128xi32>
    %15 = vector.broadcast %4 : vector<8x1xi32> to vector<8x128xi32>
    %16 = arith.cmpi eq, %14, %15 : vector<8x128xi32>
    %cst_5 = arith.constant 0.000000e+00 : f32
    %17 = vector.broadcast %cst_5 : f32 to vector<8x128xf32>
    %18 = arith.select %16, %3, %17 : vector<8x128xi1>, vector<8x128xf32>
    %cst_6 = arith.constant dense<0.000000e+00> : vector<8xf32>
    %19 = vector.multi_reduction <add>, %18, %cst_6 [1] : vector<8x128xf32> to vector<8xf32>
    %20 = vector.shape_cast %19 : vector<8xf32> to vector<8x1xf32>
    %21 = arith.subf %13, %20 : vector<8x1xf32>
    %cst_7 = arith.constant dense<0.000000e+00> : vector<8xf32>
    %22 = vector.multi_reduction <add>, %3, %cst_7 [1] : vector<8x128xf32> to vector<8xf32>
    %23 = vector.shape_cast %22 : vector<8xf32> to vector<8x1xf32>
    %cst_8 = arith.constant 7.812500e-03 : f32
    %24 = vector.broadcast %cst_8 : f32 to vector<8x1xf32>
    %25 = arith.mulf %23, %24 : vector<8x1xf32>
    %26 = arith.subf %13, %25 : vector<8x1xf32>
    %cst_9 = arith.constant 0.899999976 : f32
    %27 = vector.broadcast %cst_9 : f32 to vector<8x1xf32>
    %28 = arith.mulf %27, %21 : vector<8x1xf32>
    %cst_10 = arith.constant 1.000000e-01 : f32
    %29 = vector.broadcast %cst_10 : f32 to vector<8x1xf32>
    %30 = arith.mulf %29, %26 : vector<8x1xf32>
    %31 = arith.addf %28, %30 : vector<8x1xf32>
    %c2_i32 = arith.constant 2 : i32
    %32 = arith.muli %arg0, %c2_i32 : i32
    %33 = arith.addi %32, %arg1 : i32
    %c8_i32 = arith.constant 8 : i32
    %34 = arith.muli %33, %c8_i32 : i32
    %35 = tpu.iota {dimensions = array<i32: 0>} : vector<8x1xi32>
    %c32_i32 = arith.constant 32 : i32
    %36 = arith.subi %c32_i32, %34 : i32
    %37 = vector.broadcast %36 : i32 to vector<8x1xi32>
    %38 = arith.cmpi slt, %35, %37 : vector<8x1xi32>
    %cst_11 = arith.constant 0.000000e+00 : f32
    %39 = vector.broadcast %cst_11 : f32 to vector<8x1xf32>
    %40 = arith.select %38, %31, %39 : vector<8x1xi1>, vector<8x1xf32>
    %c0_12 = arith.constant 0 : index
    %c0_13 = arith.constant 0 : index
    %41 = vector.load %arg5[%c0_12, %c0_13] : memref<1x1xf32, #tpu.memory_space<vmem>>, vector<1x1xf32>
    %cst_14 = arith.constant dense<0.000000e+00> : vector<1xf32>
    %42 = vector.multi_reduction <add>, %40, %cst_14 [0] : vector<8x1xf32> to vector<1xf32>
    %43 = vector.shape_cast %42 : vector<1xf32> to vector<1x1xf32>
    %44 = arith.addf %41, %43 : vector<1x1xf32>
    %c0_15 = arith.constant 0 : index
    %c0_16 = arith.constant 0 : index
    %45 = vector.load %arg5[%c0_15, %c0_16] : memref<1x1xf32, #tpu.memory_space<vmem>>, vector<1x1xf32>
    tpu.vector_store %arg5[%c0_15, %c0_16], %44 {strides = array<i32>} : memref<1x1xf32, #tpu.memory_space<vmem>>, vector<1x1xf32>,
    %c1_i32 = arith.constant 1 : i32
    %46 = arith.cmpi eq, %arg1, %c1_i32 : i32
    %47 = arith.extui %46 : i1 to i32
    %c0_i32_17 = arith.constant 0 : i32
    %48 = arith.cmpi ne, %47, %c0_i32_17 : i32
    scf.if %48 {
      %c0_18 = arith.constant 0 : index
      %c0_19 = arith.constant 0 : index
      %49 = vector.load %arg5[%c0_18, %c0_19] : memref<1x1xf32, #tpu.memory_space<vmem>>, vector<1x1xf32>
      %cst_20 = arith.constant 3.125000e-02 : f32
      %50 = vector.broadcast %cst_20 : f32 to vector<1x1xf32>
      %51 = arith.mulf %49, %50 : vector<1x1xf32>
      %52 = vector.shape_cast %51 : vector<1x1xf32> to vector<1x1xf32>
      %53 = vector.broadcast %52 : vector<1x1xf32> to vector<8x128xf32>
      %c0_21 = arith.constant 0 : index
      %c0_22 = arith.constant 0 : index
      %54 = vector.load %arg4[%c0_21, %c0_22] : memref<8x128xf32, #tpu.memory_space<vmem>>, vector<8x128xf32>
      tpu.vector_store %arg4[%c0_21, %c0_22], %53 {strides = array<i32>} : memref<8x128xf32, #tpu.memory_space<vmem>>, vector<8x128xf32>,
    } else {
    }
    return
  }
  func.func @transform_0(%arg0: i32, %arg1: i32) -> (i32, i32) {
    %c2_i32 = arith.constant 2 : i32
    %0 = arith.muli %arg0, %c2_i32 : i32
    %1 = arith.addi %0, %arg1 : i32
    %c3_i32 = arith.constant 3 : i32
    %2 = arith.minsi %1, %c3_i32 : i32
    %c0_i32 = arith.constant 0 : i32
    %c0_i32_0 = arith.constant 0 : i32
    return %2, %c0_i32 : i32, i32
  }
  func.func @transform_1(%arg0: i32, %arg1: i32) -> (i32, i32) {
    %c2_i32 = arith.constant 2 : i32
    %0 = arith.muli %arg0, %c2_i32 : i32
    %1 = arith.addi %0, %arg1 : i32
    %c3_i32 = arith.constant 3 : i32
    %2 = arith.minsi %1, %c3_i32 : i32
    %c0_i32 = arith.constant 0 : i32
    %c0_i32_0 = arith.constant 0 : i32
    return %2, %c0_i32 : i32, i32
  }
  func.func @transform_2(%arg0: i32, %arg1: i32) -> (i32, i32) {
    %c0_i32 = arith.constant 0 : i32
    %c0_i32_0 = arith.constant 0 : i32
    return %arg0, %c0_i32 : i32, i32
  }
}

</mosaic_0001>

<bundles_post_ra>
// kernel: tpu_custom_call.1
= control target key start
LH: loop header
LB: loop body
LE: loop exit
PB: predicated region body
PF: predicated region fallthrough
CT: control target
= control target key end

     0   :  { %7 = vsyncpa [#allocation4], 0  ;;  %s751_s0 = inlined_call_operand.vmem [shape: f32[32,128], index: 0, kind: input, shape index: {}]   ;;  %s752_s1 = inlined_call_operand.vmem [shape: s32[32,1], index: 1, kind: input, shape index: {}]   ;;  %s753_s2 = inlined_call_operand.hbm [shape: f32[16,128], index: 2, kind: output, shape index: {}]  }
   0x1   :  { %9 = vsyncpa [#allocation4 + $0x1], 0  ;;  %s611_s9 = smov 0   ;;  %s613_s10 = smov 0  }
   0x2   :  { %s615_s11 = smov 0   ;;  %s617_s12 = smov 0  }
   0x3   :  { %s619_s13 = smov 0   ;;  %s621_s14 = smov 0  }
   0x4   :  { %s623_s15 = smov 0   ;;  %s625_s16 = smov 0  }
   0x5 LB: > { %s390_s17 = sadd.s32 4294967295, %s590_s16   ;;  %s391_s18 = sadd.s32 4294967294, %s590_s16   ;;  %s590_s16 = sphi %s625_s16, %s15_s16   ;;  %s586_s15 = sphi %s623_s15, %s762_s15   ;;  %s582_s14 = sphi %s621_s14, %s761_s14   ;;  %s578_s13 = sphi %s619_s13, %s760_s13   ;;  %s574_s12 = sphi %s617_s12, %s759_s12   ;;  %s570_s11 = sphi %s615_s11, %s758_s11   ;;  %s566_s10 = sphi %s613_s10, %s757_s10   ;;  %s562_s9 = sphi %s611_s9, %s756_s9  }
   0x6   : > { %s24_s19 = sadd.s32 1, %s582_s14  ;;  %s27_s20 = sadd.s32 1, %s586_s15 }
   0x7   : > { %p25_p0 = scmp.ge.s32.totalorder %s24_s19, 2  ;;  %p112_p1 = scmp.ne.s32.totalorder %s570_s11, %s566_s10 }
   0x8   : > { %p113_p2 = scmp.eq.s32.totalorder %s390_s17, 3  ;;  %p118_p4 = scmp.ne.s32.totalorder %s566_s10, %s562_s9 }
   0x9   : > { %s764_s19 = smov (%p25_p0, %s24_s19), 0  ;;  %s766_s20 = smov (!%p25_p0, %s27_s20), %s586_s15 }
   0xa   : > { %p660_p3 = por %p113_p2, %p112_p1  ;;  %p29_p5 = scmp.ge.s32.totalorder %s766_s20, 2 }
   0xb   : > { %p119_p6 = scmp.eq.s32.totalorder %s391_s18, 3  ;;  %p398_p7 = scmp.ge.s32.totalorder %s590_s16, 1 }
   0xc   : > { %p167_p8 = scmp.lt.s32.totalorder %s590_s16, 5  ;;  %s768_s20 = smov (%p29_p5, %s766_s20), 0 }
   0xd   : > { %p670_p9 = por %p119_p6, %p118_p4  ;;  %s99_s23 = ssub.s32 %s586_s15, %s768_s20 }
   0xe   : > { %p168_p10 = pnand %p398_p7, %p167_p8  ;;  %s102_s24 = sadd.s32 1, %s570_s11 }
   0xf   : > { %p100_p11 = scmp.eq.s32.totalorder %s99_s23, 0  ;;  %s197_s26 = sand.u32 (!%p168_p10), 1, %s566_s10  }
  0x10   : > { %171 = sbr.rel (%p168_p10) target bundleno = 523 (0x20b), region = 28  ;;  %s400_s27 = sshll.u32 (!%p168_p10), %s578_s13, 1 }
  0x11   : > { %s678_s25 = scalar_select %p100_p11, %s570_s11, %s102_s24  }
  0x12   : > { %s684_s28 = sshll.u32 (!%p168_p10), %s197_s26, 3  ;;  %s687_s29 = sadd.s32 (!%p168_p10), %s574_s12, %s400_s27 }
  0x13   : > { %p202_p12 = scmp.lt.s32.totalorder (!%p168_p10), %s687_s29, 3  ;;  %s199_s18 = scalar_lea.vmem (!%p168_p10), [#allocation3], %s684_s28 }
  0x14   : > { %p410_p13 = scmp.ne.s32.totalorder (!%p168_p10), %s574_s12, 0 }
  0x15   : > { %s203_s30 = scalar_select %p202_p12, %s687_s29, 3 }
  0x16   : > { %227 = sbr.rel (%p410_p13) target bundleno = 29 (0x1d), region = 32 }
  0x17   : > { %s770_s30 = smov (!%p202_p12, %s203_s30), 3 }
  0x18   : > { %s404_s3 = sshll.u32 %s770_s30, 3 }
  0x19   : > { %s207_s6 = scalar_lea.vmem %s751_s0, %s404_s3  ;;  %s219_s17 = scalar_lea.vmem %s752_s1, %s404_s3 }
  0x1b   : > { %vm228_vm0 = vcmask 0   ;;  %v592_v0 = vmov 0.0  }
  0x1c   : > { %229 = vst.msk [vmem:[#allocation2] sm:$0x1] %vm228_vm0, %v592_v0 }
  0x1d PF: > { %v230_v1 = vld [vmem:[%s207_s6] sm:$0xff]  ;;  %v593_v2 = vmov 0   ;;  %v242_v7 = vlaneseq  ;;  %s412_s23 = sshll.u32 %s687_s29, 3  ;;  %vm276_vm3 = vcmask 0   ;;  %p413_p0 = scmp.ne.s32.totalorder %s574_s12, 1 }
  0x1e   : > { %232 = vmax.xlane.f32.xlu0 %v230_v1  ;;  %v231_v3 = vld [vmem:[%s219_s17] sm:$0xff]  ;;  %s264_s24 = ssub.s32 32, %s412_s23 }
  0x1f   : > { %492 = vset.pattern.permute.xlu0 %v593_v2  ;;  %v243_v8 = vand.u32 127, %v242_v7  ;;  %v263_v19 = vshrl.u32 %v242_v7, 7  ;;  %v265_v21 = vstv %s264_s24 }
  0x21   : > { %vm266_vm2 = vcmp.lt.s32.totalorder %v263_v19, %v265_v21 }
  0x23   : > { %v268_v32 = vld [vmem:[#allocation2] sm:$0x1] }
  0x34   : > { %245 = vperm.xlu0 %492, %v231_v3  }
  0xa7   : > { %v233_v4 = vpop.xlane.xlu0 %232 }
  0xa8   : > { %v234_v5 = vsub.f32 %v230_v1, %v233_v4 }
  0xaa   : > { %v235_v6 = vmul.f32 1.442695, %v234_v5 }
  0xac   : > { %493 = vpow2.f32 %v235_v6 }
  0xaf   : > { %v246_v10 = vpop.permute.xlu0 %245 }
  0xb0   : > { %vm247_vm1 = vcmp.eq.s32.totalorder %v243_v8, %v246_v10 }
  0xb1   : > { %v248_v11 = vsel %vm247_vm1, %v230_v1, 0.0 }
  0xb9   : > { %v494_v9 = vpop.eup %493 }
  0xba   : > { %237 = vadd.xlane.f32.xlu1 %v494_v9 }
  0xbe   : > { %252 = vadd.xlane.f32.xlu1 %v230_v1 }
  0xc2   : > { %249 = vadd.xlane.f32.xlu1 %v248_v11 }
 0x143   : > { %v238_v12 = vpop.xlane.xlu1 %237 }
 0x144   : > { %495 = vlog2.f32 %v238_v12 }
 0x147   : > { %v253_v13 = vpop.xlane.xlu1 %252 }
 0x148   : > { %v254_v18 = vmul.f32 0.0078125, %v253_v13 }
 0x14b   : > { %v250_v16 = vpop.xlane.xlu1 %249 }
 0x151   : > { %v496_v14 = vpop.eup %495 }
 0x152   : > { %v240_v15 = vmul.f32 0.6931472, %v496_v14 }
 0x154   : > { %v241_v17 = vadd.f32 %v240_v15, %v233_v4 }
 0x156   : > { %v255_v20 = vsub.f32 %v241_v17, %v254_v18  ;;  %v251_v22 = vsub.f32 %v241_v17, %v250_v16 }
 0x158   : > { %v257_v23 = vmul.f32 0.1, %v255_v20  ;;  %v256_v24 = vmul.f32 0.9, %v251_v22 }
 0x15a   : > { %v258_v25 = vadd.f32 %v257_v23, %v256_v24 }
 0x15c   : > { %v267_v26 = vsel %vm266_vm2, %v258_v25, 0.0 }
 0x15d   : > { %v269_v27 = vrot.slane %v267_v26, 4 }
 0x15f   : > { %v270_v28 = vadd.f32 %v269_v27, %v267_v26 }
 0x161   : > { %v271_v29 = vrot.slane %v270_v28, 2 }
 0x163   : > { %v272_v30 = vadd.f32 %v271_v29, %v270_v28 }
 0x165   : > { %v273_v31 = vrot.slane %v272_v30, 1 }
 0x167   : > { %v274_v33 = vadd.f32 %v273_v31, %v272_v30  ;;  %281 = sbr.rel (%p413_p0) target bundleno = 500 (0x1f4), region = 36 }
 0x169   : > { %v275_v34 = vadd.f32 %v274_v33, %v268_v32 }
 0x16b   : > { %277 = vst.msk [vmem:[#allocation2] sm:$0x1] %vm276_vm3, %v275_v34 }
 0x16c   : > { %v287_v36 = vsub.s32 0, %v263_v19  ;;  %v594_v37 = vmov 0  }
 0x16d   : > { %497 = vset.pattern.permute.xlu0 %v594_v37 }
 0x172   : > { %v282_v35 = vld [vmem:[#allocation2] sm:$0x1] }
 0x173   : > { %v283_v38 = vmul.f32 0.03125, %v282_v35 }
 0x175   : > { %v288_v39 = vrot.slane %v283_v38, %v287_v36 }
 0x177   : > { %290 = vperm.xlu0 %497, %v288_v39  }
 0x1f2   : > { %v291_v40 = vpop.permute.xlu0 %290 }
 0x1f3   : > { %293 = vst [vmem:[%s199_s18] sm:$0xff] %v291_v40 }
 0x1f4 PF: > { %s415_s27 = sshll.u32 %s578_s13, 7  ;;  %s308_s3 = sshll.u32 %s199_s18, 4  ;;  %s309_s3 = int_to_ptr.vmem [resolvable:$true] %s308_s3 }
 0x1f5   : > { %s306_s30 = scalar_lea.hbm %s753_s2, %s415_s27  ;;  %s295_s4 = scalar_lea.sflag [#allocation4], %s197_s26 }
 0x1f6   : > { %s498_s5 = scalar_lea.vmem %s309_s3, 128  ;;  %s595_s6 = smov [#allocation3]  }
 0x1f7   : > { %p499_p1 = scmp.ne.s32.totalorder %s309_s3, %s498_s5  ;;  %s502_s7 = sshll.u32 %s595_s6, 4  ;;  %s503_s7 = int_to_ptr.vmem [resolvable:$false] %s502_s7 }
 0x1f8   : > { %s504_s8 = scalar_lea.vmem %s503_s7, 256  ;;  %p505_p5 = scmp.lt.s32.totalorder %s309_s3, %s503_s7 }
 0x1f9   : > { %p500_p2 = pnand %p499_p1, %p660_p3  ;;  %p506_p6 = scmp.lt.s32.totalorder %s504_s8, %s498_s5 }
 0x1fb   : > { %p501_p4 = pneg %p500_p2  ;;  %p507_p7 = por %p506_p6, %p505_p5 }
 0x1fd   : > { %p508_p8 = pnand %p507_p7, %p501_p4 }
 0x1ff   : > { %511 = shalt.err (!%p508_p8)
}
 0x200   : > { %s512_s13 = scalar_lea.hbm %s306_s30, 128  ;;  %s516_s17 = scalar_lea.hbm %s753_s2, 256 }
 0x201   : > { %p513_p10 = scmp.ne.s32.totalorder %s306_s30, %s512_s13  ;;  %p517_p13 = scmp.lt.s32.totalorder %s306_s30, %s753_s2 }
 0x202   : > { %p518_p0 = scmp.lt.s32.totalorder %s516_s17, %s512_s13 }
 0x203   : > { %p514_p11 = pnand %p513_p10, %p660_p3 }
 0x204   : > { %p519_p1 = por %p518_p0, %p517_p13 }
 0x205   : > { %p515_p12 = pneg %p514_p11 }
 0x207   : > { %p520_p2 = pnand %p519_p1, %p515_p12 }
 0x209   : > { %523 = shalt.err (!%p520_p2)
}
 0x20a   : > { %418 = dma.vmem_to_hbm [thread:$0]  (%p660_p3), %s309_s3, 128, %s306_s30, %s295_s4  }
 0x20b PF: > { %p424_p4 = scmp.ge.s32.totalorder %s590_s16, 2  ;;  %s320_s24 = sand.u32 1, %s562_s9  }
 0x20c   : > { %s321_s27 = scalar_lea.sflag [#allocation4], %s320_s24 }
 0x20d   : > { %p421_p5 = pnand %p424_p4, %p670_p9 }
 0x20f   : > { %p422_p6 = pneg %p421_p5 }
 0x211   : > { %557 = dma.done.wait (%p422_p6), %s321_s27, 128  }
 0x212   : > { %559 = vsyncadd (%p422_p6), %s321_s27, 4294967168  ;;  %s15_s16 = sadd.s32 1, %s590_s16   ;;  %s756_s9 = smov %s566_s10 }
 0x213   : > { %p12_p7 = scmp.ge.s32.totalorder %s15_s16, 6   ;;  %s757_s10 = smov %s570_s11 }
 0x214   : > { %s758_s11 = smov %s678_s25  ;;  %s759_s12 = smov %s582_s14 }
 0x215   : > { %s760_s13 = smov %s586_s15  ;;  %s761_s14 = smov %s764_s19 }
 0x216   : > { %s762_s15 = smov %s768_s20  ;;  %14 = sbr.rel (!%p12_p7) target bundleno = 5 (0x5), region = 74 }
 0x21b   :  { %326 = vsyncpa [#allocation4], 1 }
 0x21c   :  { %328 = vsyncpa [#allocation4 + $0x1], 1 }

</bundles_post_ra>
